<compile_context>
chip_gen: v6e
topology: v6e:2x2x1
jax: 0.10.0
libtpu: 0.0.40
codegen_flags: <defaults>
</compile_context>

<pallas_src>
import jax
import jax.numpy as jnp
from jax.experimental import pallas as pl
from jax.experimental.pallas import tpu as pltpu


def _identity_copy_kernel(x_ref, o_ref):
    # DropConnect.forward returns x unchanged.
    o_ref[...] = x_ref[...]


def _choose_layout(total_elems: int, bytes_per_elem: int):
    """Pick a lane-dense (rows, lanes) view and a block row count."""
    if total_elems % 128 != 0:
        return None  # fall back to a single full-array block

    # Widest lane axis (power-of-two multiple of 128) dividing the element count.
    lanes = 128
    while total_elems % (lanes * 2) == 0 and lanes * 2 <= 32768:
        lanes *= 2
    rows = total_elems // lanes

    # Cap a single block at ~2 MiB so in+out double-buffering (4x block bytes
    # live) stays well inside v5e's 16 MiB / v7x's 32 MiB scoped VMEM defaults.
    max_block_bytes = 2 * 1024 * 1024
    max_rows = max(1, max_block_bytes // (lanes * bytes_per_elem))

    if rows <= max_rows:
        block_rows = rows  # single (or few) big blocks; full extent is legal
    else:
        block_rows = rows  # fallback: full extent (always legal)
        cand = (max_rows // 8) * 8
        while cand >= 8:
            if rows % cand == 0:  # block rows must divide + be a multiple of 8
                block_rows = cand
                break
            cand -= 8
    return rows, lanes, block_rows


def drop_connect(x, drop_connect_rate: float = 0.0):
    """Pallas implementation of DropConnect.forward (identity).

    NOTE: in a real model the cheapest correct implementation is simply
    `return x` (zero HBM traffic); the kernel exists to demonstrate an
    efficient lane-dense tiled copy.  drop_connect_rate is unused because the
    reference module's forward ignores it.
    """
    orig_shape = x.shape
    total = x.size
    layout = _choose_layout(total, jnp.dtype(x.dtype).itemsize)

    if layout is None:
        # Element count not a multiple of 128: single full-array block
        # (correct; only hit for tiny / odd shapes).
        rows, lanes, block_rows = 1, total, 1
        flat = x.reshape(rows, lanes)
    else:
        rows, lanes, block_rows = layout
        flat = x.reshape(rows, lanes)

    grid = (rows // block_rows,)

    out = pl.pallas_call(
        _identity_copy_kernel,
        out_shape=jax.ShapeDtypeStruct((rows, lanes), x.dtype),
        grid=grid,
        in_specs=[pl.BlockSpec((block_rows, lanes), lambda i: (i, 0))],
        out_specs=pl.BlockSpec((block_rows, lanes), lambda i: (i, 0)),
        compiler_params=pltpu.CompilerParams(
            dimension_semantics=("parallel",),
        ),
    )(flat)
    return out.reshape(orig_shape)


if __name__ == "__main__":
    key = jax.random.PRNGKey(0)
    # NCHW input, small shape consistent with a conv feature map.
    x = jax.random.normal(key, (2, 4, 16, 16), dtype=jnp.float32)

    y = drop_connect(x, drop_connect_rate=0.2)
    y = jax.block_until_ready(y)

    assert y.shape == x.shape and y.dtype == x.dtype
    assert bool(jnp.all(y == x))  # identity semantics
    print("KERNEL_OK")
</pallas_src>

<mosaic_0001>
module attributes {stable_mosaic.version = 11 : i64} {
  func.func @_identity_copy_kernel(%arg0: i32, %arg1: memref<1x2048xf32, #tpu.memory_space<vmem>>, %arg2: memref<1x2048xf32, #tpu.memory_space<vmem>>) attributes {dimension_semantics = [#tpu.dimension_semantics<parallel>], iteration_bounds = array<i64: 1>, scalar_prefetch = 0 : i64, scratch_operands = 0 : i64, tpu.core_type = #tpu.core_type<tc>, window_params = [{transform_indices = @transform_0, window_bounds = array<i64: 1, 2048>}, {transform_indices = @transform_1, window_bounds = array<i64: 1, 2048>}]} {
    %c0 = arith.constant 0 : index
    %c0_0 = arith.constant 0 : index
    %0 = vector.load %arg1[%c0, %c0_0] : memref<1x2048xf32, #tpu.memory_space<vmem>>, vector<1x2048xf32>
    %c0_1 = arith.constant 0 : index
    %c0_2 = arith.constant 0 : index
    %1 = vector.load %arg2[%c0_1, %c0_2] : memref<1x2048xf32, #tpu.memory_space<vmem>>, vector<1x2048xf32>
    tpu.vector_store %arg2[%c0_1, %c0_2], %0 {strides = array<i32>} : memref<1x2048xf32, #tpu.memory_space<vmem>>, vector<1x2048xf32>,
    return
  }
  func.func @transform_0(%arg0: i32) -> (i32, i32) {
    %c0_i32 = arith.constant 0 : i32
    %c0_i32_0 = arith.constant 0 : i32
    return %arg0, %c0_i32 : i32, i32
  }
  func.func @transform_1(%arg0: i32) -> (i32, i32) {
    %c0_i32 = arith.constant 0 : i32
    %c0_i32_0 = arith.constant 0 : i32
    return %arg0, %c0_i32 : i32, i32
  }
}

</mosaic_0001>

<bundles_post_ra>
// kernel: tpu_custom_call.1
= control target key start
LH: loop header
LB: loop body
LE: loop exit
PB: predicated region body
PF: predicated region fallthrough
CT: control target
= control target key end

     0   :  { %6 = vsyncpa [#allocation3], 0  ;;  %s104_s0 = inlined_call_operand.hbm [shape: f32[1,2048], index: 0, kind: input, shape index: {}]   ;;  %s105_s1 = inlined_call_operand.hbm [shape: f32[1,2048], index: 1, kind: output, shape index: {}]  }
   0x1   :  { %7 = vsyncpa [#allocation4], 0  ;;  %s86_s6 = smov [#allocation2]  }
   0x2   :  { %s14_s7 = sshll.u32 %s86_s6, 4  ;;  %s15_s7 = int_to_ptr.vmem [resolvable:$true] %s14_s7 }
   0x3   :  { %s50_s8 = scalar_lea.vmem %s15_s7, 256  ;;  %p55_p1 = scmp.lt.s32.totalorder %s15_s7, %s15_s7 }
   0x4   :  { %p51_p0 = scmp.ne.s32.totalorder %s15_s7, %s50_s8  ;;  %p56_p2 = scmp.lt.s32.totalorder %s50_s8, %s50_s8 }
   0x6   :  { %p57_p3 = por %p56_p2, %p55_p1 }
   0x8   :  { %p58_p4 = pnand %p57_p3, %p51_p0 }
   0xa   :  { %61 = shalt.err (!%p58_p4)
}
   0xb   :  { %17 = dma.hbm_to_vmem [thread:$0]  %s104_s0, 256, %s15_s7, [#allocation3]  }
   0xc   :  { %82 = dma.done.wait [#allocation3], 256  }
   0xd   :  { %83 = vsyncadd [#allocation3], 4294967040  ;;  %s87_s11 = smov [#allocation5]   ;;  %v21_v0 = vld [vmem:[#allocation2] sm:$0xff]  ;;  %v22_v1 = vld [vmem:[#allocation2 + $0x8] sm:$0xff] }
   0xe   :  { %s31_s12 = sshll.u32 %s87_s11, 4  ;;  %23 = vst [vmem:[#allocation5] sm:$0xff] %v21_v0  ;;  %24 = vst [vmem:[#allocation5 + $0x8] sm:$0xff] %v22_v1  ;;  %s32_s12 = int_to_ptr.vmem [resolvable:$true] %s31_s12 }
   0xf   :  { %s62_s13 = scalar_lea.vmem %s32_s12, 256  ;;  %p67_p6 = scmp.lt.s32.totalorder %s32_s12, %s32_s12 }
  0x10   :  { %p63_p5 = scmp.ne.s32.totalorder %s32_s12, %s62_s13  ;;  %p68_p7 = scmp.lt.s32.totalorder %s62_s13, %s62_s13 }
  0x12   :  { %p69_p8 = por %p68_p7, %p67_p6 }
  0x14   :  { %p70_p9 = pnand %p69_p8, %p63_p5 }
  0x16   :  { %73 = shalt.err (!%p70_p9)
}
  0x17   :  { %34 = dma.vmem_to_hbm [thread:$0]  %s32_s12, 256, %s105_s1, [#allocation4]  }
  0x18   :  { %84 = dma.done.wait [#allocation4], 256  }
  0x19   :  { %85 = vsyncadd [#allocation4], 4294967040 }
  0x1a   :  { %38 = vsyncpa [#allocation3], 1 }
  0x1b   :  { %39 = vsyncpa [#allocation4], 1 }

</bundles_post_ra>
